<compile_context>
chip_gen: v5e
topology: v5e:2x2
jax: 0.10.0
libtpu: 0.0.40
codegen_flags: <defaults>
</compile_context>

<pallas_src>
import jax
import jax.numpy as jnp
from jax.experimental import pallas as pl
from jax.experimental.pallas import tpu as pltpu


# ----------------------------------------------------------------------------
# Pallas kernel: out = sigmoid(x @ w + b)
#   x_ref: (tm, Kp)   w_ref: (Kp, dout)   b_ref: (1, dout)   o_ref: (tm, dout)
# ----------------------------------------------------------------------------
def _logreg_kernel(x_ref, w_ref, b_ref, o_ref):
    # MXU matmul with f32 accumulation.  K is zero-padded, so padded rows/cols
    # contribute exactly 0 to the dot product.
    z = jnp.dot(x_ref[...], w_ref[...], preferred_element_type=jnp.float32)
    z = z + b_ref[...]                              # broadcast (1, dout)
    # sigmoid; exp(-z) -> inf for very negative z still yields the correct 0.
    o_ref[...] = (1.0 / (1.0 + jnp.exp(-z))).astype(o_ref.dtype)


def _choose_row_tile(M, Kp):
    """Row tile from a VMEM-budget / pipeline-depth tradeoff (not a fixed 64)."""
    tm = 512                                     # big tiles amortize ~0.35us/step
    while tm > 8 and tm > M:
        tm //= 2
    # keep the double-buffered x tile well under the scoped VMEM limit
    while tm > 8 and 2 * tm * Kp * 4 > (8 << 20):
        tm //= 2
    return max(tm, 8)


def logreg_forward(x, weight, bias):
    """x: (..., din) any leading shape, weight: (dout, din), bias: (dout,).

    Returns sigmoid(x.reshape(-1, din) @ weight.T + bias) as (M, dout) float32,
    matching logreg_phishing.forward.
    """
    dout, din = weight.shape
    x2d = x.reshape(-1, din).astype(jnp.float32)
    M = x2d.shape[0]

    # Pad contraction dim to a multiple of 128 (lane-aligned loads / MXU feed).
    Kp = pl.cdiv(din, 128) * 128
    # Pick the row tile and pad M up to a multiple of it.
    tm = _choose_row_tile(M, Kp)
    Mp = pl.cdiv(M, tm) * tm

    x_p = jnp.zeros((Mp, Kp), jnp.float32).at[:M, :din].set(x2d)
    w_p = jnp.zeros((Kp, dout), jnp.float32).at[:din, :].set(
        weight.astype(jnp.float32).T)
    b_p = bias.astype(jnp.float32).reshape(1, dout)

    # TODO(synk): for very large din, add a K grid axis ("arbitrary") with an
    # f32 accumulator scratch instead of holding the whole (Kp, dout) weight.
    out = pl.pallas_call(
        _logreg_kernel,
        out_shape=jax.ShapeDtypeStruct((Mp, dout), jnp.float32),
        grid_spec=pltpu.PrefetchScalarGridSpec(
            num_scalar_prefetch=0,
            grid=(Mp // tm,),
            in_specs=[
                pl.BlockSpec((tm, Kp), lambda i: (i, 0)),    # streamed row tiles
                pl.BlockSpec((Kp, dout), lambda i: (0, 0)),  # grid-invariant W
                pl.BlockSpec((1, dout), lambda i: (0, 0)),   # grid-invariant b
            ],
            out_specs=pl.BlockSpec((tm, dout), lambda i: (i, 0)),
        ),
        compiler_params=pltpu.CompilerParams(
            dimension_semantics=("parallel",)),
        cost_estimate=pl.CostEstimate(
            flops=2 * Mp * Kp * dout,
            transcendentals=Mp * dout,
            bytes_accessed=4 * (Mp * Kp + Kp * dout + dout + Mp * dout)),
    )(x_p, w_p, b_p)

    return out[:M]                                  # drop padded rows


if __name__ == "__main__":
    key = jax.random.PRNGKey(0)
    k_x, k_w, k_b = jax.random.split(key, 3)

    # logreg_phishing(din=68, dout=1); the forward flattens with x.view(-1, din),
    # so feed a (2, 4, 68) batch -> 8 rows of 68 features.
    din, dout = 68, 1
    x = jax.random.normal(k_x, (2, 4, din), jnp.float32)
    weight = 0.1 * jax.random.normal(k_w, (dout, din), jnp.float32)  # torch Linear layout
    bias = 0.1 * jax.random.normal(k_b, (dout,), jnp.float32)

    fwd = jax.jit(logreg_forward)
    out = fwd(x, weight, bias)
    jax.block_until_ready(out)

    ref = jax.nn.sigmoid(x.reshape(-1, din) @ weight.T + bias[None, :])
    assert out.shape == (2 * 4, dout)
    assert jnp.allclose(out, ref, atol=1e-4, rtol=1e-4), "mismatch vs JAX reference"

    print("KERNEL_OK")
</pallas_src>

<mosaic_0001>
module attributes {stable_mosaic.version = 11 : i64} {
  func.func @_logreg_kernel(%arg0: i32, %arg1: memref<8x128xf32, #tpu.memory_space<vmem>>, %arg2: memref<128x1xf32, #tpu.memory_space<vmem>>, %arg3: memref<1x1xf32, #tpu.memory_space<vmem>>, %arg4: memref<8x1xf32, #tpu.memory_space<vmem>>) attributes {dimension_semantics = [#tpu.dimension_semantics<parallel>], iteration_bounds = array<i64: 1>, scalar_prefetch = 0 : i64, scratch_operands = 0 : i64, tpu.core_type = #tpu.core_type<tc>, window_params = [{transform_indices = @transform_0, window_bounds = array<i64: 8, 128>}, {pipeline_mode = #tpu.pipeline_mode<synchronous>, transform_indices = @transform_1, window_bounds = array<i64: 128, 1>}, {pipeline_mode = #tpu.pipeline_mode<synchronous>, transform_indices = @transform_2, window_bounds = array<i64: 1, 1>}, {transform_indices = @transform_3, window_bounds = array<i64: 8, 1>}]} {
    %c0 = arith.constant 0 : index
    %c0_0 = arith.constant 0 : index
    %0 = vector.load %arg1[%c0, %c0_0] : memref<8x128xf32, #tpu.memory_space<vmem>>, vector<8x128xf32>
    %c0_1 = arith.constant 0 : index
    %c0_2 = arith.constant 0 : index
    %1 = vector.load %arg2[%c0_1, %c0_2] : memref<128x1xf32, #tpu.memory_space<vmem>>, vector<128x1xf32>
    %cst = arith.constant dense<0.000000e+00> : vector<8x1xf32>
    %2 = tpu.matmul %0, %1, %cst {dimension_numbers = #tpu.dot_dimension_numbers<[1], [0], [0], [1], [0, 0, 1, 1], [], []>} : vector<8x128xf32>, vector<128x1xf32>, vector<8x1xf32> -> vector<8x1xf32>
    %c0_3 = arith.constant 0 : index
    %c0_4 = arith.constant 0 : index
    %3 = vector.load %arg3[%c0_3, %c0_4] : memref<1x1xf32, #tpu.memory_space<vmem>>, vector<1x1xf32>
    %4 = vector.broadcast %3 : vector<1x1xf32> to vector<8x1xf32>
    %5 = arith.addf %2, %4 : vector<8x1xf32>
    %cst_5 = arith.constant 0.000000e+00 : f32
    %6 = vector.broadcast %cst_5 : f32 to vector<8x1xf32>
    %7 = arith.subf %6, %5 : vector<8x1xf32>
    %8 = math.exp %7 : vector<8x1xf32>
    %cst_6 = arith.constant 1.000000e+00 : f32
    %9 = vector.broadcast %cst_6 : f32 to vector<8x1xf32>
    %10 = arith.addf %9, %8 : vector<8x1xf32>
    %cst_7 = arith.constant 1.000000e+00 : f32
    %11 = vector.broadcast %cst_7 : f32 to vector<8x1xf32>
    %12 = arith.divf %11, %10 : vector<8x1xf32>
    %c0_8 = arith.constant 0 : index
    %c0_9 = arith.constant 0 : index
    %13 = vector.load %arg4[%c0_8, %c0_9] : memref<8x1xf32, #tpu.memory_space<vmem>>, vector<8x1xf32>
    tpu.vector_store %arg4[%c0_8, %c0_9], %12 {strides = array<i32>} : memref<8x1xf32, #tpu.memory_space<vmem>>, vector<8x1xf32>,
    return
  }
  func.func @transform_0(%arg0: i32) -> (i32, i32) {
    %c0_i32 = arith.constant 0 : i32
    %c0_i32_0 = arith.constant 0 : i32
    return %arg0, %c0_i32 : i32, i32
  }
  func.func @transform_1(%arg0: i32) -> (i32, i32) {
    %c0_i32 = arith.constant 0 : i32
    %c0_i32_0 = arith.constant 0 : i32
    %c0_i32_1 = arith.constant 0 : i32
    return %c0_i32, %c0_i32_0 : i32, i32
  }
  func.func @transform_2(%arg0: i32) -> (i32, i32) {
    %c0_i32 = arith.constant 0 : i32
    %c0_i32_0 = arith.constant 0 : i32
    %c0_i32_1 = arith.constant 0 : i32
    return %c0_i32, %c0_i32_0 : i32, i32
  }
  func.func @transform_3(%arg0: i32) -> (i32, i32) {
    %c0_i32 = arith.constant 0 : i32
    %c0_i32_0 = arith.constant 0 : i32
    return %arg0, %c0_i32 : i32, i32
  }
}

</mosaic_0001>

<bundles_post_ra>
// kernel: logreg_forward.1
= control target key start
LH: loop header
LB: loop body
LE: loop exit
PB: predicated region body
PF: predicated region fallthrough
CT: control target
= control target key end

     0   :  { %vm76_vm3 = vcmask 7168   ;;  %s164_s1 = inlined_call_operand.vmem [shape: f32[128,1], index: 1, kind: input, shape index: {}]   ;;  %s165_s2 = inlined_call_operand.<no memory space> [shape: f32[1,1], index: 2, kind: input, shape index: {}]   ;;  %s166_s0 = inlined_call_operand.vmem [shape: f32[8,128], index: 0, kind: input, shape index: {}]   ;;  %s167_s3 = inlined_call_operand.vmem [shape: f32[8,1], index: 3, kind: output, shape index: {}]  }
   0x1   :  { %v32_v0 = vld [vmem:[%s164_s1 + $0x78] sm:$0xff]  ;;  %v31_v1 = vld [vmem:[%s164_s1 + $0x70] sm:$0xff]  ;;  %v8_v2 = vstv %s165_s2  ;;  %v30_v3 = vld [vmem:[%s164_s1 + $0x68] sm:$0xff] }
   0x2   :  { %37 = vmatpush.msra.mxu0 %v32_v0  ;;  %9 = vst [vmem:[#allocation2] sm:$0x1] %v8_v2  ;;  %v29_v4 = vld [vmem:[%s164_s1 + $0x60] sm:$0xff]  ;;  %v28_v5 = vld [vmem:[%s164_s1 + $0x58] sm:$0xff]  ;;  %v27_v6 = vld [vmem:[%s164_s1 + $0x50] sm:$0xff] }
   0x3   :  { %v26_v7 = vld [vmem:[%s164_s1 + $0x48] sm:$0xff]  ;;  %v25_v8 = vld [vmem:[%s164_s1 + $0x40] sm:$0xff]  ;;  %v24_v9 = vld [vmem:[%s164_s1 + $0x38] sm:$0xff] }
   0x4   :  { %38 = vmatpush.msra.mxu0 %v31_v1  ;;  %v23_v10 = vld [vmem:[%s164_s1 + $0x30] sm:$0xff]  ;;  %v22_v11 = vld [vmem:[%s164_s1 + $0x28] sm:$0xff]  ;;  %v21_v12 = vld [vmem:[%s164_s1 + $0x20] sm:$0xff] }
   0x5   :  { %v20_v13 = vld [vmem:[%s164_s1 + $0x18] sm:$0xff]  ;;  %v19_v14 = vld [vmem:[%s164_s1 + $0x10] sm:$0xff]  ;;  %v18_v15 = vld [vmem:[%s164_s1 + $0x8] sm:$0xff] }
   0x6   :  { %39 = vmatpush.msra.mxu0 %v30_v3  ;;  %v17_v16 = vld [vmem:[%s164_s1] sm:$0xff] }
   0x7   :  { %v16_v17 = vld [vmem:[%s166_s0] sm:$0xff] }
   0x8   :  { %40 = vmatpush.msra.mxu0 %v29_v4 }
   0x9   :  { %v82_v18 = vld [vmem:[#allocation2] ss:$0 sm:$0xff] }
   0xa   :  { %41 = vmatpush.msra.mxu0 %v28_v5 }
   0xc   :  { %42 = vmatpush.msra.mxu0 %v27_v6 }
   0xe   :  { %43 = vmatpush.msra.mxu0 %v26_v7 }
  0x10   :  { %44 = vmatpush.msra.mxu0 %v25_v8 }
  0x12   :  { %45 = vmatpush.msra.mxu0 %v24_v9 }
  0x14   :  { %46 = vmatpush.msra.mxu0 %v23_v10 }
  0x16   :  { %47 = vmatpush.msra.mxu0 %v22_v11 }
  0x18   :  { %48 = vmatpush.msra.mxu0 %v21_v12 }
  0x1a   :  { %49 = vmatpush.msra.mxu0 %v20_v13 }
  0x1c   :  { %50 = vmatpush.msra.mxu0 %v19_v14 }
  0x1e   :  { %51 = vmatpush.msra.mxu0 %v18_v15 }
  0x20   :  { %52 = vmatpush.msra.mxu0 %v17_v16 }
  0x21   :  { %53 = vmatmul.f32.vlgmr.msra.gmra.mxu0 %v16_v17 }
  0x9e   :  { %v54_v19 = vpop.f32.mrf.mxu0 }
  0x9f   :  { %v55_v20 = vadd.f32 %v82_v18, %v54_v19 }
  0xa1   :  { %v57_v21 = vsub.f32 0.0, %v55_v20 }
  0xa3   :  { %v58_v22 = vmul.f32 1.442695, %v57_v21 }
  0xa5   :  { %83 = vpow2.f32 %v58_v22 }
  0xab   :  { %v84_v23 = vpop.eup %83 }
  0xac   :  { %v60_v24 = vadd.f32 1.0, %v84_v23 }
  0xae   :  { %85 = vrcp.f32 %v60_v24  ;;  %v72_v28 = vand.u32 2147483648, %v60_v24  ;;  %v70_v30 = vand.u32 2147483647, %v60_v24  ;;  %vm66_vm1 = vweird.f32 %v60_v24 }
  0xb0   :  { %v73_v32 = vor.u32 1.1754944e-38, %v72_v28  ;;  %vm71_vm4 = vcmp.eq.f32.partialorder %v70_v30, 8.507059e+37 }
  0xb4   :  { %v86_v25 = vpop.eup %85 }
  0xb5   :  { %v62_v26 = vmul.f32 %v86_v25, %v60_v24  ;;  %vm67_vm0 = vweird.f32 %v86_v25 }
  0xb6   :  { %vm68_vm2 = vmor %vm66_vm1, %vm67_vm0 }
  0xb7   :  { %v63_v27 = vsub.f32 1.0, %v62_v26 }
  0xb9   :  { %v64_v29 = vmul.f32 %v86_v25, %v63_v27 }
  0xbb   :  { %v65_v31 = vadd.f32 %v86_v25, %v64_v29 }
  0xbd   :  { %v69_v33 = vsel %vm68_vm2, %v86_v25, %v65_v31 }
  0xbe   :  { %v74_v34 = vsel %vm71_vm4, %v73_v32, %v69_v33 }
  0xbf   :  { %77 = vst.msk [vmem:[%s167_s3] sm:$0xff] %vm76_vm3, %v74_v34 }

</bundles_post_ra>
